<compile_context>
chip_gen: v7x
topology: tpu7x:2x2x1
jax: 0.10.0
libtpu: 0.0.40
codegen_flags: <defaults>
</compile_context>

<pallas_src>
import jax
import jax.numpy as jnp
from jax.experimental import pallas as pl
from jax.experimental.pallas import tpu as pltpu

BN_EPS = 1e-5
_LANE = 128


def _round_up(x, m):
    return (x + m - 1) // m * m


# ----------------------------------------------------------------------------
# Kernels
# ----------------------------------------------------------------------------
def _bn_kernel(src_ref, tgt_ref, ws_ref, wt_ref, gb_ref, out_ref):
    """batch > 1 path: two fused MXU dots + BatchNorm1d (batch stats) + ReLU.
    Bias is intentionally omitted: BN's mean subtraction cancels any
    per-feature constant (variance unchanged)."""
    ws = ws_ref[...]
    wt = wt_ref[...]
    h = jnp.dot(src_ref[...].astype(ws.dtype), ws,
                preferred_element_type=jnp.float32)
    h = h + jnp.dot(tgt_ref[...].astype(wt.dtype), wt,
                    preferred_element_type=jnp.float32)

    # Per-feature batch mean / biased variance (stats are per-feature, so
    # tiling the feature axis is exact; the batch axis is fully resident).
    mean = jnp.mean(h, axis=0, keepdims=True)
    centered = h - mean
    var = jnp.mean(centered * centered, axis=0, keepdims=True)
    h = centered * jax.lax.rsqrt(var + BN_EPS)

    gb = gb_ref[...]                       # (2, tn): row 0 = gamma, row 1 = beta
    h = h * gb[0:1, :] + gb[1:2, :]
    out_ref[...] = jnp.maximum(h, 0.0).astype(out_ref.dtype)


def _nobn_kernel(src_ref, tgt_ref, ws_ref, wt_ref, bias_ref, out_ref):
    """batch == 1 path: two fused MXU dots + combined bias + ReLU (no BN)."""
    ws = ws_ref[...]
    wt = wt_ref[...]
    h = jnp.dot(src_ref[...].astype(ws.dtype), ws,
                preferred_element_type=jnp.float32)
    h = h + jnp.dot(tgt_ref[...].astype(wt.dtype), wt,
                    preferred_element_type=jnp.float32)
    h = h + bias_ref[...]
    out_ref[...] = jnp.maximum(h, 0.0).astype(out_ref.dtype)


# ----------------------------------------------------------------------------
# Parameter init / packing
# ----------------------------------------------------------------------------
def init_params(key, hdim, path_dim):
    """Raw params matching PathEncoder.__init__ (xavier_uniform weights,
    PyTorch-default uniform biases, BN gamma=1 / beta=0).  Weights are stored
    pre-transposed as (in_features, out_features)."""
    k1, k2, k3, k4 = jax.random.split(key, 4)

    def xavier_uniform(k, fan_in, fan_out):
        bound = jnp.sqrt(6.0 / (fan_in + fan_out))
        return jax.random.uniform(k, (fan_in, fan_out), jnp.float32,
                                  minval=-bound, maxval=bound)

    def bias_init(k, fan_in, fan_out):
        bound = 1.0 / jnp.sqrt(float(fan_in))
        return jax.random.uniform(k, (1, fan_out), jnp.float32,
                                  minval=-bound, maxval=bound)

    return {
        "w_src_t": xavier_uniform(k1, hdim, hdim),
        "b_src":   bias_init(k2, hdim, hdim),
        "w_tgt_t": xavier_uniform(k3, path_dim, hdim),
        "b_tgt":   bias_init(k4, path_dim, hdim),
        "gamma":   jnp.ones((1, hdim), jnp.float32),
        "beta":    jnp.zeros((1, hdim), jnp.float32),
    }


def pack_params(raw, hdim, path_dim, weight_dtype=jnp.bfloat16):
    """One-time packing: zero-pad ONLY the output-feature dim to a multiple of
    128 (lane-dense weight stream / stores).  K stays unpadded — it is never
    tiled, so the BlockSpec uses the full array dim.  gamma/beta are merged
    into a single (2, N_pad) array (one vector DMA per grid step); the two
    Linear biases are pre-added into one row for the batch==1 path."""
    n_pad = _round_up(hdim, _LANE)
    pad_n = n_pad - hdim

    w_src = jnp.pad(raw["w_src_t"], ((0, 0), (0, pad_n))).astype(weight_dtype)
    w_tgt = jnp.pad(raw["w_tgt_t"], ((0, 0), (0, pad_n))).astype(weight_dtype)
    bias = jnp.pad(raw["b_src"] + raw["b_tgt"],
                   ((0, 0), (0, pad_n))).astype(jnp.float32)
    gb = jnp.concatenate(
        [jnp.pad(raw["gamma"], ((0, 0), (0, pad_n)), constant_values=1.0),
         jnp.pad(raw["beta"], ((0, 0), (0, pad_n)))],
        axis=0).astype(jnp.float32)

    return {
        "w_src": w_src,          # (hdim,     N_pad)
        "w_tgt": w_tgt,          # (path_dim, N_pad)
        "bias":  bias,           # (1, N_pad)  combined Linear biases
        "gb":    gb,             # (2, N_pad)  [gamma; beta]
        "hdim": hdim,
        "path_dim": path_dim,
        "n_pad": n_pad,
    }


# ----------------------------------------------------------------------------
# Generation-aware tiling
# ----------------------------------------------------------------------------
def _tpu_config():
    """Size VMEM budget / max tile per chip generation.  128-MiB-VMEM parts
    (v5e/v6e) get big tiles; the 64-MiB part (v7x, the only 2-TC chip) keeps a
    conservative budget and prefers >=2 feature tiles for megacore sharding."""
    try:
        vmem = int(pltpu.get_tpu_info().vmem_capacity_bytes)
    except Exception:
        vmem = 64 << 20                      # conservative default
    if vmem >= (96 << 20):                   # v5e / v6e (128 MiB physical)
        return dict(vmem_limit=96 << 20, budget=64 << 20,
                    max_tile=2048, prefer_multi_tile=False)
    return dict(vmem_limit=32 << 20, budget=20 << 20,   # v7x (64 MiB physical)
                max_tile=512, prefer_multi_tile=True)


def _pick_feature_tile(n_pad, fixed_bytes, per_col_bytes, cfg):
    """Pick the feature-tile width: must divide n_pad, be a 128 multiple, fit
    the VMEM budget.  Prefer (v7x only) >=2 tiles so both TensorCores stream
    weights, then 256-multiples (v6e/v7x MXU width), then the largest."""
    max_tile = min(cfg["max_tile"], n_pad)
    cands = [t for t in range(_LANE, max_tile + _LANE, _LANE) if n_pad % t == 0]

    def fits(t):
        bufs = 2 if n_pad // t > 1 else 1    # grid=(1,) -> no double buffering
        return fixed_bytes + bufs * per_col_bytes * t <= cfg["budget"]

    feas = [t for t in cands if fits(t)]
    if not feas:
        # Graceful degradation: smallest tile; vmem_limit_bytes gives headroom
        # over the (advisory) budget model.
        return _LANE

    def score(t):
        ntiles = n_pad // t
        multi = 1 if (not cfg["prefer_multi_tile"] or ntiles >= 2
                      or n_pad == _LANE) else 0
        wide = 1 if (t % 256 == 0 or n_pad < 256) else 0
        return (multi, wide, t)

    return max(feas, key=score)


# ----------------------------------------------------------------------------
# Forward wrapper
# ----------------------------------------------------------------------------
def path_encoder_forward(src, tgt, packed, *, return_padded=False):
    """src: (B, hdim), tgt: (B, path_dim)  ->  (B, hdim) float32
    (or (B, N_pad) lane-dense if return_padded=True, to let the consumer fuse
    the slice instead of paying an extra HBM round trip)."""
    batch = src.shape[0]
    hdim, path_dim, n_pad = packed["hdim"], packed["path_dim"], packed["n_pad"]
    w_src, w_tgt = packed["w_src"], packed["w_tgt"]

    cfg = _tpu_config()
    w_isize = jnp.dtype(w_src.dtype).itemsize
    x_isize = jnp.dtype(src.dtype).itemsize

    # VMEM model: src/tgt have constant index maps -> resident, counted once;
    # per-tile operands (weight panels, epilogue rows, output) scale with tn.
    fixed_bytes = batch * (hdim + path_dim) * x_isize
    per_col_bytes = (hdim + path_dim) * w_isize + 3 * 4 + batch * 4
    tn = _pick_feature_tile(n_pad, fixed_bytes, per_col_bytes, cfg)
    grid = (n_pad // tn,)

    # Activations stay in their native layout: full-array blocks, no K padding,
    # no wrapper-side concat/cast (cast to the weight dtype happens in-kernel).
    src_spec = pl.BlockSpec((batch, hdim), lambda j: (0, 0))
    tgt_spec = pl.BlockSpec((batch, path_dim), lambda j: (0, 0))
    ws_spec = pl.BlockSpec((hdim, tn), lambda j: (0, j))
    wt_spec = pl.BlockSpec((path_dim, tn), lambda j: (0, j))
    out_spec = pl.BlockSpec((batch, tn), lambda j: (0, j))

    compiler_params = pltpu.CompilerParams(
        dimension_semantics=("parallel",),          # feature tiles independent
        vmem_limit_bytes=cfg["vmem_limit"],
    )

    use_bn = batch > 1                              # static, resolved at trace time
    if use_bn:
        kernel = _bn_kernel
        args = (src, tgt, w_src, w_tgt, packed["gb"])
        in_specs = [src_spec, tgt_spec, ws_spec, wt_spec,
                    pl.BlockSpec((2, tn), lambda j: (0, j))]
    else:
        kernel = _nobn_kernel
        args = (src, tgt, w_src, w_tgt, packed["bias"])
        in_specs = [src_spec, tgt_spec, ws_spec, wt_spec,
                    pl.BlockSpec((1, tn), lambda j: (0, j))]

    out = pl.pallas_call(
        kernel,
        out_shape=jax.ShapeDtypeStruct((batch, n_pad), jnp.float32),
        grid=grid,
        in_specs=in_specs,
        out_specs=out_spec,
        compiler_params=compiler_params,
    )(*args)

    if return_padded or n_pad == hdim:
        return out
    return out[:, :hdim]


# ----------------------------------------------------------------------------
# Pure-JAX reference (faithful to the torch module: biases always added)
# ----------------------------------------------------------------------------
def _reference(src, tgt, raw, compute_dtype=jnp.float32):
    w = jnp.concatenate([raw["w_src_t"], raw["w_tgt_t"]], axis=0)
    x = jnp.concatenate([src, tgt], axis=1)
    h = jnp.dot(x.astype(compute_dtype), w.astype(compute_dtype),
                preferred_element_type=jnp.float32)
    h = h + raw["b_src"] + raw["b_tgt"]
    if src.shape[0] > 1:
        mean = jnp.mean(h, axis=0, keepdims=True)
        var = jnp.mean((h - mean) ** 2, axis=0, keepdims=True)   # biased, like torch
        h = (h - mean) / jnp.sqrt(var + BN_EPS)
        h = h * raw["gamma"] + raw["beta"]
    return jnp.maximum(h, 0.0)


if __name__ == "__main__":
    key = jax.random.PRNGKey(0)
    B, hdim, path_dim = 8, 32, 16

    kp, ks, kt = jax.random.split(key, 3)
    raw = init_params(kp, hdim, path_dim)
    src = jax.random.normal(ks, (B, hdim), jnp.float32)
    tgt = jax.random.normal(kt, (B, path_dim), jnp.float32)

    # Default path: bf16 weights (halved HBM weight stream), f32 accumulate +
    # f32 epilogue, BatchNorm (B > 1).
    packed_bf16 = pack_params(raw, hdim, path_dim)          # bf16 by default
    out_bf = jax.block_until_ready(path_encoder_forward(src, tgt, packed_bf16))
    ref_bf = _reference(src, tgt, raw, compute_dtype=jnp.bfloat16)
    assert out_bf.shape == (B, hdim)
    assert jnp.allclose(out_bf, ref_bf, atol=2e-2, rtol=2e-2), "bf16 BN mismatch"

    # batch == 1 path (plain bias + ReLU, no BatchNorm), bf16 weights.
    out1 = jax.block_until_ready(
        path_encoder_forward(src[:1], tgt[:1], packed_bf16))
    ref1 = _reference(src[:1], tgt[:1], raw, compute_dtype=jnp.bfloat16)
    assert jnp.allclose(out1, ref1, atol=2e-2, rtol=2e-2), "bf16 B=1 mismatch"

    # f32 weights: exact match against the f32 reference.
    packed_f32 = pack_params(raw, hdim, path_dim, jnp.float32)
    out = jax.block_until_ready(path_encoder_forward(src, tgt, packed_f32))
    ref = _reference(src, tgt, raw)
    assert jnp.allclose(out, ref, atol=1e-4, rtol=1e-4), "f32 BN mismatch"
    out1f = jax.block_until_ready(
        path_encoder_forward(src[:1], tgt[:1], packed_f32))
    ref1f = _reference(src[:1], tgt[:1], raw)
    assert jnp.allclose(out1f, ref1f, atol=1e-4, rtol=1e-4), "f32 B=1 mismatch"

    # Padded (lane-dense) output variant for downstream fusion.
    out_pad = jax.block_until_ready(
        path_encoder_forward(src, tgt, packed_f32, return_padded=True))
    assert out_pad.shape == (B, packed_f32["n_pad"])
    assert jnp.allclose(out_pad[:, :hdim], ref, atol=1e-4, rtol=1e-4)

    print("KERNEL_OK")
</pallas_src>

<mosaic_0001>
module attributes {stable_mosaic.version = 11 : i64} {
  func.func @_bn_kernel(%arg0: i32, %arg1: memref<8x32xf32, #tpu.memory_space<vmem>>, %arg2: memref<8x16xf32, #tpu.memory_space<vmem>>, %arg3: memref<32x128xbf16, #tpu.memory_space<vmem>>, %arg4: memref<16x128xbf16, #tpu.memory_space<vmem>>, %arg5: memref<2x128xf32, #tpu.memory_space<vmem>>, %arg6: memref<8x128xf32, #tpu.memory_space<vmem>>) attributes {dimension_semantics = [#tpu.dimension_semantics<parallel>], iteration_bounds = array<i64: 1>, scalar_prefetch = 0 : i64, scratch_operands = 0 : i64, tpu.core_type = #tpu.core_type<tc>, window_params = [{pipeline_mode = #tpu.pipeline_mode<synchronous>, transform_indices = @transform_0, window_bounds = array<i64: 8, 32>}, {pipeline_mode = #tpu.pipeline_mode<synchronous>, transform_indices = @transform_1, window_bounds = array<i64: 8, 16>}, {transform_indices = @transform_2, window_bounds = array<i64: 32, 128>}, {transform_indices = @transform_3, window_bounds = array<i64: 16, 128>}, {transform_indices = @transform_4, window_bounds = array<i64: 2, 128>}, {transform_indices = @transform_5, window_bounds = array<i64: 8, 128>}]} {
    %c0 = arith.constant 0 : index
    %c0_0 = arith.constant 0 : index
    %0 = vector.load %arg3[%c0, %c0_0] : memref<32x128xbf16, #tpu.memory_space<vmem>>, vector<32x128xbf16>
    %c0_1 = arith.constant 0 : index
    %c0_2 = arith.constant 0 : index
    %1 = vector.load %arg4[%c0_1, %c0_2] : memref<16x128xbf16, #tpu.memory_space<vmem>>, vector<16x128xbf16>
    %c0_3 = arith.constant 0 : index
    %c0_4 = arith.constant 0 : index
    %2 = vector.load %arg1[%c0_3, %c0_4] : memref<8x32xf32, #tpu.memory_space<vmem>>, vector<8x32xf32>
    %3 = arith.truncf %2 : vector<8x32xf32> to vector<8x32xbf16>
    %cst = arith.constant dense<0.000000e+00> : vector<8x128xf32>
    %4 = tpu.matmul %3, %0, %cst {dimension_numbers = #tpu.dot_dimension_numbers<[1], [0], [0], [1], [0, 0, 1, 1], [], []>} : vector<8x32xbf16>, vector<32x128xbf16>, vector<8x128xf32> -> vector<8x128xf32>
    %c0_5 = arith.constant 0 : index
    %c0_6 = arith.constant 0 : index
    %5 = vector.load %arg2[%c0_5, %c0_6] : memref<8x16xf32, #tpu.memory_space<vmem>>, vector<8x16xf32>
    %6 = arith.truncf %5 : vector<8x16xf32> to vector<8x16xbf16>
    %cst_7 = arith.constant dense<0.000000e+00> : vector<8x128xf32>
    %7 = tpu.matmul %6, %1, %cst_7 {dimension_numbers = #tpu.dot_dimension_numbers<[1], [0], [0], [1], [0, 0, 1, 1], [], []>} : vector<8x16xbf16>, vector<16x128xbf16>, vector<8x128xf32> -> vector<8x128xf32>
    %8 = arith.addf %4, %7 : vector<8x128xf32>
    %cst_8 = arith.constant dense<0.000000e+00> : vector<128xf32>
    %9 = vector.multi_reduction <add>, %8, %cst_8 [0] : vector<8x128xf32> to vector<128xf32>
    %10 = vector.shape_cast %9 : vector<128xf32> to vector<1x128xf32>
    %cst_9 = arith.constant 8.000000e+00 : f32
    %11 = vector.broadcast %cst_9 : f32 to vector<1x128xf32>
    %12 = arith.divf %10, %11 : vector<1x128xf32>
    %13 = vector.broadcast %12 : vector<1x128xf32> to vector<8x128xf32>
    %14 = arith.subf %8, %13 : vector<8x128xf32>
    %15 = arith.mulf %14, %14 : vector<8x128xf32>
    %cst_10 = arith.constant dense<0.000000e+00> : vector<128xf32>
    %16 = vector.multi_reduction <add>, %15, %cst_10 [0] : vector<8x128xf32> to vector<128xf32>
    %17 = vector.shape_cast %16 : vector<128xf32> to vector<1x128xf32>
    %cst_11 = arith.constant 8.000000e+00 : f32
    %18 = vector.broadcast %cst_11 : f32 to vector<1x128xf32>
    %19 = arith.divf %17, %18 : vector<1x128xf32>
    %cst_12 = arith.constant 9.99999974E-6 : f32
    %20 = vector.broadcast %cst_12 : f32 to vector<1x128xf32>
    %21 = arith.addf %19, %20 : vector<1x128xf32>
    %22 = math.rsqrt %21 : vector<1x128xf32>
    %23 = vector.broadcast %22 : vector<1x128xf32> to vector<8x128xf32>
    %24 = arith.mulf %14, %23 : vector<8x128xf32>
    %c0_13 = arith.constant 0 : index
    %c0_14 = arith.constant 0 : index
    %25 = vector.load %arg5[%c0_13, %c0_14] : memref<2x128xf32, #tpu.memory_space<vmem>>, vector<2x128xf32>
    %26 = vector.extract_strided_slice %25 {offsets = [0, 0], sizes = [1, 128], strides = [1, 1]} : vector<2x128xf32> to vector<1x128xf32>
    %27 = vector.broadcast %26 : vector<1x128xf32> to vector<8x128xf32>
    %28 = arith.mulf %24, %27 : vector<8x128xf32>
    %29 = vector.extract_strided_slice %25 {offsets = [1, 0], sizes = [1, 128], strides = [1, 1]} : vector<2x128xf32> to vector<1x128xf32>
    %30 = vector.broadcast %29 : vector<1x128xf32> to vector<8x128xf32>
    %31 = arith.addf %28, %30 : vector<8x128xf32>
    %cst_15 = arith.constant 0.000000e+00 : f32
    %32 = vector.broadcast %cst_15 : f32 to vector<8x128xf32>
    %33 = arith.maximumf %31, %32 : vector<8x128xf32>
    %c0_16 = arith.constant 0 : index
    %c0_17 = arith.constant 0 : index
    %34 = vector.load %arg6[%c0_16, %c0_17] : memref<8x128xf32, #tpu.memory_space<vmem>>, vector<8x128xf32>
    tpu.vector_store %arg6[%c0_16, %c0_17], %33 {strides = array<i32>} : memref<8x128xf32, #tpu.memory_space<vmem>>, vector<8x128xf32>,
    return
  }
  func.func @transform_0(%arg0: i32) -> (i32, i32) {
    %c0_i32 = arith.constant 0 : i32
    %c0_i32_0 = arith.constant 0 : i32
    %c0_i32_1 = arith.constant 0 : i32
    return %c0_i32, %c0_i32_0 : i32, i32
  }
  func.func @transform_1(%arg0: i32) -> (i32, i32) {
    %c0_i32 = arith.constant 0 : i32
    %c0_i32_0 = arith.constant 0 : i32
    %c0_i32_1 = arith.constant 0 : i32
    return %c0_i32, %c0_i32_0 : i32, i32
  }
  func.func @transform_2(%arg0: i32) -> (i32, i32) {
    %c0_i32 = arith.constant 0 : i32
    %c0_i32_0 = arith.constant 0 : i32
    return %c0_i32, %arg0 : i32, i32
  }
  func.func @transform_3(%arg0: i32) -> (i32, i32) {
    %c0_i32 = arith.constant 0 : i32
    %c0_i32_0 = arith.constant 0 : i32
    return %c0_i32, %arg0 : i32, i32
  }
  func.func @transform_4(%arg0: i32) -> (i32, i32) {
    %c0_i32 = arith.constant 0 : i32
    %c0_i32_0 = arith.constant 0 : i32
    return %c0_i32, %arg0 : i32, i32
  }
  func.func @transform_5(%arg0: i32) -> (i32, i32) {
    %c0_i32 = arith.constant 0 : i32
    %c0_i32_0 = arith.constant 0 : i32
    return %c0_i32, %arg0 : i32, i32
  }
}

</mosaic_0001>

<bundles_post_ra>
// kernel: tpu_custom_call.1
= control target key start
LH: loop header
LB: loop body
LE: loop exit
PB: predicated region body
PF: predicated region fallthrough
CT: control target
= control target key end

     0   :  { %10 = vsyncpa [#allocation3], 0  ;;  %s448_s0 = inlined_call_operand.hbm [shape: f32[8,32], index: 0, kind: input, shape index: {}]   ;;  %s449_s1 = inlined_call_operand.hbm [shape: f32[8,16], index: 1, kind: input, shape index: {}]   ;;  %s450_s2 = inlined_call_operand.hbm [shape: bf16[32,128], index: 2, kind: input, shape index: {}]   ;;  %s451_s3 = inlined_call_operand.vmem [shape: bf16[16,128], index: 3, kind: input, shape index: {}]   ;;  %s452_s4 = inlined_call_operand.vmem [shape: f32[2,128], index: 4, kind: input, shape index: {}]   ;;  %s453_s5 = inlined_call_operand.hbm [shape: f32[8,128], index: 5, kind: output, shape index: {}]  }
   0x1   :  { %11 = vsyncpa [#allocation6], 0 }
   0x2   :  { %12 = vsyncpa [#allocation4], 0  ;;  %s356_s18 = smov [#allocation5]   ;;  %s357_s20 = smov [#allocation2]  }
   0x3   :  { %s29_s19 = sshll.u32 %s356_s18, 4  ;;  %s19_s21 = sshll.u32 %s357_s20, 4  ;;  %s30_s19 = int_to_ptr.vmem [resolvable:$true] %s29_s19  ;;  %s20_s21 = int_to_ptr.vmem [resolvable:$true] %s19_s21 }
   0x4   :  { %s262_s24 = scalar_lea.hbm %s449_s1, 128 }
   0x5   :  { %p263_p0 = scmp.ne.s32.totalorder %s449_s1, %s262_s24  ;;  %p266_p1 = scmp.lt.u32.totalorder %s262_s24, %s449_s1 }
   0x7   :  { %p268_p2 = pnand %p266_p1, %p263_p0 }
   0x9   :  { %271 = shalt.err (!%p268_p2)
}
   0xa   :  { %s272_s29 = scalar_lea.vmem %s30_s19, 128  ;;  %p277_p4 = scmp.lt.s32.totalorder %s30_s19, %s30_s19 }
   0xb   :  { %p273_p3 = scmp.ne.s32.totalorder %s30_s19, %s272_s29  ;;  %p278_p5 = scmp.lt.s32.totalorder %s272_s29, %s272_s29 }
   0xd   :  { %p279_p6 = por %p278_p5, %p277_p4 }
   0xf   :  { %p280_p7 = pnand %p279_p6, %p273_p3 }
  0x11   :  { %283 = shalt.err (!%p280_p7)
}
  0x12   :  { %32 = dma.hbm_to_vmem [thread:$0]  %s449_s1, 128, %s30_s19, [#allocation6]  }
  0x13   :  { %s284_s9 = scalar_lea.hbm %s448_s0, 128 }
  0x14   :  { %p285_p8 = scmp.ne.s32.totalorder %s448_s0, %s284_s9  ;;  %p288_p9 = scmp.lt.u32.totalorder %s284_s9, %s448_s0 }
  0x16   :  { %p290_p10 = pnand %p288_p9, %p285_p8 }
  0x18   :  { %293 = shalt.err (!%p290_p10)
}
  0x19   :  { %s294_s14 = scalar_lea.vmem %s20_s21, 128  ;;  %p299_p12 = scmp.lt.s32.totalorder %s20_s21, %s20_s21 }
  0x1a   :  { %p295_p11 = scmp.ne.s32.totalorder %s20_s21, %s294_s14  ;;  %p300_p13 = scmp.lt.s32.totalorder %s294_s14, %s294_s14 }
  0x1c   :  { %p301_p0 = por %p300_p13, %p299_p12 }
  0x1e   :  { %p302_p1 = pnand %p301_p0, %p295_p11 }
  0x20   :  { %305 = shalt.err (!%p302_p1)
}
  0x21   :  { %22 = dma.hbm_to_vmem [thread:$0]  %s448_s0, 128, %s20_s21, [#allocation3]  }
  0x22   :  { %s358_s16 = smov [#allocation7]   ;;  %s306_s20 = scalar_lea.hbm %s450_s2, 256 }
  0x23   :  { %s38_s17 = sshll.u32 %s358_s16, 4  ;;  %p307_p2 = scmp.ne.s32.totalorder %s450_s2, %s306_s20  ;;  %s39_s17 = int_to_ptr.vmem [resolvable:$true] %s38_s17 }
  0x24   :  { %p310_p3 = scmp.lt.u32.totalorder %s306_s20, %s450_s2 }
  0x26   :  { %p312_p4 = pnand %p310_p3, %p307_p2 }
  0x28   :  { %315 = shalt.err (!%p312_p4)
}
  0x29   :  { %s316_s26 = scalar_lea.vmem %s39_s17, 256  ;;  %p321_p6 = scmp.lt.s32.totalorder %s39_s17, %s39_s17 }
  0x2a   :  { %p317_p5 = scmp.ne.s32.totalorder %s39_s17, %s316_s26  ;;  %p322_p7 = scmp.lt.s32.totalorder %s316_s26, %s316_s26 }
  0x2c   :  { %p323_p8 = por %p322_p7, %p321_p6 }
  0x2e   :  { %p324_p9 = pnand %p323_p8, %p317_p5 }
  0x30   :  { %327 = shalt.err (!%p324_p9)
}
  0x31   :  { %s359_s0 = smov 64   ;;  %s360_s21 = smov 4  }
  0x32   :  { %44 = dma.hbm_to_vmem [thread:$0]  %s450_s2, 256, %s39_s17, [#allocation6], %s359_s0, %s359_s0, %s360_s21  }
  0x33   :  { %350 = dma.done.wait [#allocation3], 128  }
  0x34   :  { %351 = vsyncadd [#allocation3], 4294967168 }
  0x35   :  { %352 = dma.done.wait [#allocation6], 384  }
  0x36   :  { %353 = vsyncadd [#allocation6], 4294966912  ;;  %v361_v0 = vmov 0.0   ;;  %vm362_vm0 = vmmov 0   ;;  %v257_v1 = vld [vmem:[#allocation7] sm:$0xff]   ;;  %v258_v2 = vld [vmem:[%s451_s3] sm:$0xff]   ;;  %v196_v33 = vlaneseq }
  0x37   :  { %240 = vmatprep.subr.bf16.mxu0 %v361_v0  ;;  %234 = vmatprep.subr.bf16.mxu1 %v361_v0  ;;  %v67_v3 = vld [vmem:[#allocation5] sm:$0xff]  ;;  %vm75_vm1 = vcmask 130048   ;;  %v259_v5 = vld [vmem:[#allocation7 + $0x8] sm:$0xff]   ;;  %v65_v6 = vld [vmem:[#allocation2] sm:$0xff]  ;;  %vm131_vm2 = vcmask 261120   ;;  %s363_s6 = smov [#allocation8]  }
  0x38   :  { %236 = vmatprep.mubr.msk.bf16.mxu1 %vm362_vm0, %v361_v0  ;;  %244 = vmatprep.mubr.msk.bf16.mxu0 %vm362_vm0, %v361_v0  ;;  %v68_v4 = vpack.c.bf16 %v67_v3, %v67_v3  ;;  %v66_v7 = vpack.c.bf16 %v65_v6, %v65_v6  ;;  %v197_v35 = vshrl.u32 %v196_v33, 7  ;;  %v195_v37 = vld [vmem:[%s452_s4] sm:$0x3]  ;;  %s214_s7 = sshll.u32 %s363_s6, 4  ;;  %s215_s7 = int_to_ptr.vmem [resolvable:$true] %s214_s7 }
  0x39   :  { %241 = vmatpush3.bf16.msra.mxu0 %v257_v1  ;;  %235 = vmatpush3.bf16.msra.mxu1 %v258_v2  ;;  %s328_s8 = scalar_lea.vmem %s215_s7, 128  ;;  %p333_p11 = scmp.lt.s32.totalorder %s215_s7, %s215_s7 }
  0x3a   :  { %242 = vmatprep.subr.bf16.mxu0 %v361_v0  ;;  %v198_v36 = vsub.s32 0, %v197_v35  ;;  %v203_v38 = vsub.s32 1, %v197_v35  ;;  %p329_p10 = scmp.ne.s32.totalorder %s215_s7, %s328_s8  ;;  %p334_p12 = scmp.lt.s32.totalorder %s328_s8, %s328_s8 }
  0x3c   :  { %237 = vmatmul.mubr.msk.bf16.vlgmr.msra.gmra.mrb[0].mxu1 %vm75_vm1, %v68_v4  ;;  %v199_v39 = vrot.slane %v195_v37, %v198_v36  ;;  %v204_v42 = vrot.slane %v195_v37, %v203_v38  ;;  %p335_p13 = por %p334_p12, %p333_p11 }
  0x3d   :  { %243 = vmatpush3.bf16.msra.mxu0 %v259_v5 }
  0x3e   :  { %p336_p0 = pnand %p335_p13, %p329_p10 }
  0x40   :  { %245 = vmatmul.mubr.msk.bf16.vlgmr.msra.gmra.mrb[0].mxu0 %vm131_vm2, %v66_v7 }
 0x10f   :  { %v113_v8 = vpop.f32.mrb[0].mxu1 }
 0x110   :  { %v238_v9 = vpop.f32.mrb[1].mxu1 }
 0x111   :  { %v116_v10 = vpop.f32.mrb[2].mxu1 }
 0x112   :  { %v239_v11 = vpop.f32.mrb[3].mxu1 }
 0x113   :  { %v169_v12 = vpop.f32.mrb[0].mxu0 }
 0x114   :  { %v170_v13 = vadd.f32 %v169_v12, %v113_v8  ;;  %v246_v14 = vpop.f32.mrb[1].mxu0 }
 0x115   :  { %v172_v15 = vpop.f32.mrb[2].mxu0 }
 0x116   :  { %v175_v16 = vrot.slane %v170_v13, 4  ;;  %v247_v17 = vpop.f32.mrb[3].mxu0 }
 0x118   :  { %v176_v18 = vadd.f32 %v175_v16, %v170_v13 }
 0x11a   :  { %v177_v19 = vrot.slane %v176_v18, 2 }
 0x11c   :  { %v178_v20 = vadd.f32 %v177_v19, %v176_v18 }
 0x11e   :  { %v179_v21 = vrot.slane %v178_v20, 1 }
 0x120   :  { %v180_v22 = vadd.f32 %v179_v21, %v178_v20 }
 0x122   :  { %v182_v23 = vmul.f32 0.125, %v180_v22 }
 0x124   :  { %v183_v24 = vsub.f32 %v170_v13, %v182_v23 }
 0x126   :  { %v184_v25 = vmul.f32 %v183_v24, %v183_v24 }
 0x128   :  { %v185_v26 = vrot.slane %v184_v25, 4 }
 0x12a   :  { %v186_v27 = vadd.f32 %v185_v26, %v184_v25 }
 0x12c   :  { %v187_v28 = vrot.slane %v186_v27, 2 }
 0x12e   :  { %v188_v29 = vadd.f32 %v187_v28, %v186_v27 }
 0x130   :  { %v189_v30 = vrot.slane %v188_v29, 1 }
 0x132   :  { %v190_v31 = vadd.f32 %v189_v30, %v188_v29 }
 0x134   :  { %v191_v32 = vmul.f32 0.125, %v190_v31 }
 0x136   :  { %v192_v34 = vadd.f32 1e-05, %v191_v32 }
 0x138   :  { %260 = vrsqrt.f32 %v192_v34 }
 0x142   :  { %v261_v40 = vpop.eup %260 }
 0x143   :  { %v194_v41 = vmul.f32 %v261_v40, %v183_v24 }
 0x145   :  { %v200_v43 = vmul.f32 %v199_v39, %v194_v41 }
 0x147   :  { %v205_v44 = vadd.f32 %v204_v42, %v200_v43 }
 0x149   :  { %v206_v45 = vmax.f32 %v205_v44, 0.0 }
 0x14b   :  { %207 = vst [vmem:[#allocation8] sm:$0xff] %v206_v45 }
 0x14c   :  { %339 = shalt.err (!%p336_p0)
}
 0x14d   :  { %s340_s10 = scalar_lea.hbm %s453_s5, 128 }
 0x14e   :  { %p341_p1 = scmp.ne.s32.totalorder %s453_s5, %s340_s10  ;;  %p344_p2 = scmp.lt.u32.totalorder %s340_s10, %s453_s5 }
 0x150   :  { %p346_p3 = pnand %p344_p2, %p341_p1 }
 0x152   :  { %349 = shalt.err (!%p346_p3)
}
 0x153   :  { %217 = dma.vmem_to_hbm [thread:$0]  %s215_s7, 128, %s453_s5, [#allocation4]  }
 0x154   :  { %354 = dma.done.wait [#allocation4], 128  }
 0x155   :  { %355 = vsyncadd [#allocation4], 4294967168 }
 0x156   :  { %221 = vsyncpa [#allocation3], 1 }
 0x157   :  { %222 = vsyncpa [#allocation6], 1 }
 0x158   :  { %223 = vsyncpa [#allocation4], 1 }

</bundles_post_ra>
